<compile_context>
chip_gen: v7x
topology: tpu7x:2x2x1
jax: 0.10.0
libtpu: 0.0.40
codegen_flags: <defaults>
</compile_context>

<pallas_src>
import functools

import jax
import jax.numpy as jnp
from jax.experimental import pallas as pl
from jax.experimental.pallas import tpu as pltpu

_LANE = 128
_SUBLANE = 8
_MAX_BLOCK_ROWS = 512          # (512, 512) f32 block = 1 MiB per buffer


def _slab_geometry(n):
    """Pick a sublane/lane-dense (R, C) layout and row-block size for length n."""
    c = 4 * _LANE if n >= 4 * _LANE * _SUBLANE else _LANE     # 512 or 128 lanes
    rows = pl.cdiv(n, c)
    rows = pl.cdiv(rows, _SUBLANE) * _SUBLANE                 # sublane multiple
    tr = min(_MAX_BLOCK_ROWS, rows)                           # rows per grid block
    g = pl.cdiv(rows, tr)
    r_pad = g * tr
    return r_pad, c, tr, g


def init_state(num_samples):
    """ARIMA noise state: (head, tail_slab).

    head      = noise[0, 0]   (shape (1,), never modified by forward)
    tail_slab = noise[0, 1:]  stored row-major in a dense (R, C) f32 slab
                              (trailing entries are padding).
    """
    n = num_samples - 1
    r_pad, c, _, _ = _slab_geometry(n)
    head = jnp.zeros((1,), jnp.float32)
    tail_slab = jnp.zeros((r_pad, c), jnp.float32)
    return head, tail_slab


def state_to_noise(head, tail_slab, num_samples):
    """Rebuild the dense (1, num_samples) noise row (for checks / export)."""
    n = num_samples - 1
    tail = tail_slab.reshape(-1)[:n]
    return jnp.concatenate([head, tail]).reshape(1, num_samples)


def _arima_kernel(params_ref, carries_ref, w_ref, state_ref, out_ref):
    # params_ref : SMEM (2,)  = [theta, drift]
    # carries_ref: SMEM (G,)  carries[i] = flattened old-state element that
    #              precedes grid block i (carries[0] = noise[0, 0]).
    # w_ref / state_ref / out_ref: (TR, C) VMEM tiles of the W / state / out slabs.
    theta = params_ref[0]
    drift = params_ref[1]
    carry = carries_ref[pl.program_id(0)]

    state = state_ref[...]                                  # (TR, C) f32
    tr, c = state.shape

    # old[r, j] = state[r, j-1] for j >= 1      (lane roll on the XLU)
    rolled = pltpu.roll(state, shift=1, axis=1)

    # old[r, 0] = state[r-1, C-1]; old[0, 0] = carry from the previous block.
    prev_rows = pltpu.roll(state, shift=1, axis=0)          # sublane roll
    prev_last = prev_rows[:, c - 1:c]                       # (TR, 1)
    row_ids = jax.lax.broadcasted_iota(jnp.int32, (tr, 1), 0)
    prev_last = jnp.where(row_ids == 0, carry, prev_last)

    col_ids = jax.lax.broadcasted_iota(jnp.int32, (tr, c), 1)
    old = jnp.where(col_ids == 0, prev_last, rolled)

    # One fused FMA on the VPU and ONE aligned full-width store.  This tile is
    # simultaneously the model output and the new noise-tail state (aliased).
    out_ref[...] = w_ref[...] + theta * old - drift


@functools.partial(jax.jit, donate_argnums=(4,))
def arima_forward(W, theta, drift, head, tail_slab):
    """One ARIMA forward step.

    W            : (n,) f32
    theta, drift : (1,) f32 parameters
    head         : (1,) f32        noise[0, 0]  (unchanged by forward)
    tail_slab    : (R, C) f32      noise[0, 1:] slab; DONATED, updated in place.

    Returns (out, new_tail_slab).  `out` has shape (n,); `new_tail_slab` is the
    updated noise tail (bit-identical to out, written once by the kernel).
    """
    n = W.shape[0]
    r_pad, c = tail_slab.shape
    tr = min(_MAX_BLOCK_ROWS, r_pad)
    assert r_pad % tr == 0 and c % _LANE == 0 and r_pad * c >= n
    g = r_pad // tr

    # theta/drift packed into a single (2,) SMEM operand.
    params = jnp.concatenate([theta, drift]).astype(jnp.float32)

    # Per-block carries: the flattened state element just before each block.
    if g == 1:
        carries = head.astype(jnp.float32)
    else:
        boundary = tail_slab[tr - 1::tr, c - 1][:g - 1]
        carries = jnp.concatenate([head, boundary]).astype(jnp.float32)

    # Lay W out in the same dense slab (trailing zeros are padding).
    pad = r_pad * c - n
    w_flat = W.astype(jnp.float32)
    if pad:
        w_flat = jnp.pad(w_flat, (0, pad))
    w_slab = w_flat.reshape(r_pad, c)

    out_slab = pl.pallas_call(
        _arima_kernel,
        grid=(g,),
        out_shape=jax.ShapeDtypeStruct((r_pad, c), jnp.float32),
        in_specs=[
            pl.BlockSpec(memory_space=pltpu.SMEM),        # params  (2,)
            pl.BlockSpec(memory_space=pltpu.SMEM),        # carries (G,)
            pl.BlockSpec((tr, c), lambda i: (i, 0)),      # W slab
            pl.BlockSpec((tr, c), lambda i: (i, 0)),      # noise-tail slab
        ],
        out_specs=pl.BlockSpec((tr, c), lambda i: (i, 0)),
        input_output_aliases={3: 0},                      # in-place state update
        compiler_params=pltpu.CompilerParams(
            dimension_semantics=("parallel",),            # shards across v7x's 2 TCs
            vmem_limit_bytes=32 * 1024 * 1024,
        ),
    )(params, carries, w_slab, tail_slab)

    out = out_slab.reshape(r_pad * c)
    if pad:
        out = out[:n]
    return out, out_slab


if __name__ == "__main__":
    key = jax.random.PRNGKey(0)
    k_theta, k_drift, k_w1, k_w2 = jax.random.split(key, 4)

    num_samples = 129            # noise buffer length; W has num_samples - 1 entries
    n = num_samples - 1

    # Deterministic parameter init (mirrors Uniform(0,1).sample((1,)))
    theta = jax.random.uniform(k_theta, (1,), dtype=jnp.float32)
    drift = jax.random.uniform(k_drift, (1,), dtype=jnp.float32)
    W1 = jax.random.normal(k_w1, (n,), dtype=jnp.float32)
    W2 = jax.random.normal(k_w2, (n,), dtype=jnp.float32)

    head, tail = init_state(num_samples)

    # Plain-JAX reference over two forward steps (PyTorch semantics).
    noise0 = jnp.zeros((1, num_samples), dtype=jnp.float32)
    ref1 = W1 + theta[0] * noise0[0, :-1] - drift[0]
    noise1 = noise0.at[0, 1:].set(ref1)
    ref2 = W2 + theta[0] * noise1[0, :-1] - drift[0]
    noise2 = noise1.at[0, 1:].set(ref2)
    jax.block_until_ready((ref1, noise1, ref2, noise2))

    # Step 1.
    out1, tail = arima_forward(W1, theta, drift, head, tail)
    out1, tail = jax.block_until_ready((out1, tail))
    got_noise1 = jax.block_until_ready(state_to_noise(head, tail, num_samples))
    assert out1.shape == (n,)
    assert jnp.allclose(out1, ref1, atol=1e-6), "step-1 output mismatch"
    assert jnp.allclose(got_noise1, noise1, atol=1e-6), "step-1 noise state mismatch"

    # Step 2 (exercises the shift-by-one read of a non-zero carried state).
    out2, tail = arima_forward(W2, theta, drift, head, tail)
    out2, tail = jax.block_until_ready((out2, tail))
    got_noise2 = jax.block_until_ready(state_to_noise(head, tail, num_samples))
    assert jnp.allclose(out2, ref2, atol=1e-6), "step-2 output mismatch"
    assert jnp.allclose(got_noise2, noise2, atol=1e-6), "step-2 noise state mismatch"

    print("KERNEL_OK")
</pallas_src>

<mosaic_0001>
module attributes {stable_mosaic.version = 11 : i64} {
  func.func @_arima_kernel(%arg0: i32, %arg1: memref<2xf32, #tpu.memory_space<smem>>, %arg2: memref<1xf32, #tpu.memory_space<smem>>, %arg3: memref<8x128xf32, #tpu.memory_space<vmem>>, %arg4: memref<8x128xf32, #tpu.memory_space<vmem>>, %arg5: memref<8x128xf32, #tpu.memory_space<vmem>>) attributes {dimension_semantics = [#tpu.dimension_semantics<parallel>], iteration_bounds = array<i64: 1>, scalar_prefetch = 0 : i64, scratch_operands = 0 : i64, tpu.core_type = #tpu.core_type<tc>, window_params = [{transform_indices = @transform_0, window_bounds = array<i64: 2>}, {transform_indices = @transform_1, window_bounds = array<i64: 1>}, {transform_indices = @transform_2, window_bounds = array<i64: 8, 128>}, {transform_indices = @transform_3, window_bounds = array<i64: 8, 128>}, {transform_indices = @transform_4, window_bounds = array<i64: 8, 128>}]} {
    %c0 = arith.constant 0 : index
    %0 = memref.load %arg1[%c0] : memref<2xf32, #tpu.memory_space<smem>>
    %c1 = arith.constant 1 : index
    %1 = memref.load %arg1[%c1] : memref<2xf32, #tpu.memory_space<smem>>
    %2 = arith.index_cast %arg0 : i32 to index
    %3 = memref.load %arg2[%2] : memref<1xf32, #tpu.memory_space<smem>>
    %c0_0 = arith.constant 0 : index
    %c0_1 = arith.constant 0 : index
    %4 = vector.load %arg4[%c0_0, %c0_1] : memref<8x128xf32, #tpu.memory_space<vmem>>, vector<8x128xf32>
    %c1_i32 = arith.constant 1 : i32
    %5 = tpu.dynamic_rotate %4 by %c1_i32 dim 1 : vector<8x128xf32>, i32 -> vector<8x128xf32>
    %c1_i32_2 = arith.constant 1 : i32
    %6 = tpu.dynamic_rotate %4 by %c1_i32_2 dim 0 : vector<8x128xf32>, i32 -> vector<8x128xf32>
    %7 = vector.extract_strided_slice %6 {offsets = [0, 127], sizes = [8, 1], strides = [1, 1]} : vector<8x128xf32> to vector<8x1xf32>
    %8 = tpu.iota {dimensions = array<i32: 0>} : vector<8x1xi32>
    %c0_i32 = arith.constant 0 : i32
    %9 = vector.broadcast %c0_i32 : i32 to vector<8x1xi32>
    %10 = arith.cmpi eq, %8, %9 : vector<8x1xi32>
    %11 = vector.broadcast %3 : f32 to vector<8x1xf32>
    %12 = arith.select %10, %11, %7 : vector<8x1xi1>, vector<8x1xf32>
    %13 = tpu.iota {dimensions = array<i32: 1>} : vector<8x128xi32>
    %c0_i32_3 = arith.constant 0 : i32
    %14 = vector.broadcast %c0_i32_3 : i32 to vector<8x128xi32>
    %15 = arith.cmpi eq, %13, %14 : vector<8x128xi32>
    %16 = vector.shape_cast %12 : vector<8x1xf32> to vector<8x1xf32>
    %17 = vector.broadcast %16 : vector<8x1xf32> to vector<8x128xf32>
    %18 = arith.select %15, %17, %5 : vector<8x128xi1>, vector<8x128xf32>
    %c0_4 = arith.constant 0 : index
    %c0_5 = arith.constant 0 : index
    %19 = vector.load %arg3[%c0_4, %c0_5] : memref<8x128xf32, #tpu.memory_space<vmem>>, vector<8x128xf32>
    %20 = vector.broadcast %0 : f32 to vector<8x128xf32>
    %21 = arith.mulf %20, %18 : vector<8x128xf32>
    %22 = arith.addf %19, %21 : vector<8x128xf32>
    %23 = vector.broadcast %1 : f32 to vector<8x128xf32>
    %24 = arith.subf %22, %23 : vector<8x128xf32>
    %c0_6 = arith.constant 0 : index
    %c0_7 = arith.constant 0 : index
    %25 = vector.load %arg5[%c0_6, %c0_7] : memref<8x128xf32, #tpu.memory_space<vmem>>, vector<8x128xf32>
    tpu.vector_store %arg5[%c0_6, %c0_7], %24 {strides = array<i32>} : memref<8x128xf32, #tpu.memory_space<vmem>>, vector<8x128xf32>,
    return
  }
  func.func @transform_0(%arg0: i32) -> i32 {
    %c0_i32 = arith.constant 0 : i32
    %c0_i32_0 = arith.constant 0 : i32
    return %c0_i32 : i32
  }
  func.func @transform_1(%arg0: i32) -> i32 {
    %c0_i32 = arith.constant 0 : i32
    %c0_i32_0 = arith.constant 0 : i32
    return %c0_i32 : i32
  }
  func.func @transform_2(%arg0: i32) -> (i32, i32) {
    %c0_i32 = arith.constant 0 : i32
    %c0_i32_0 = arith.constant 0 : i32
    return %arg0, %c0_i32 : i32, i32
  }
  func.func @transform_3(%arg0: i32) -> (i32, i32) {
    %c0_i32 = arith.constant 0 : i32
    %c0_i32_0 = arith.constant 0 : i32
    return %arg0, %c0_i32 : i32, i32
  }
  func.func @transform_4(%arg0: i32) -> (i32, i32) {
    %c0_i32 = arith.constant 0 : i32
    %c0_i32_0 = arith.constant 0 : i32
    return %arg0, %c0_i32 : i32, i32
  }
}

</mosaic_0001>

<bundles_post_ra>
// kernel: arima_forward.1
= control target key start
LH: loop header
LB: loop body
LE: loop exit
PB: predicated region body
PF: predicated region fallthrough
CT: control target
= control target key end

     0   :  { %10 = vsyncpa [#allocation4], 0  ;;  %s126_s0 = inlined_call_operand.vmem [shape: f32[2], index: 0, kind: input, shape index: {}]   ;;  %s127_s1 = inlined_call_operand.<no memory space> [shape: f32[1], index: 1, kind: input, shape index: {}]   ;;  %s128_s2 = inlined_call_operand.vmem [shape: f32[8,128], index: 2, kind: input, shape index: {}]   ;;  %s129_s3 = inlined_call_operand.vmem [shape: f32[8,128], index: 3, kind: input, shape index: {}, may-alias: {3,4}]   ;;  %s130_s4 = inlined_call_operand.vmem [shape: f32[8,128], index: 4, kind: output, shape index: {}, may-alias: {3,4}]  }
   0x1   :  { %s17_s17 = sshll.u32 %s126_s0, 4  ;;  %s18_s17 = int_to_ptr.vmem [resolvable:$true] %s17_s17 }
   0x2   :  { %s69_s18 = scalar_lea.vmem %s18_s17, 16  ;;  %p74_p1 = scmp.lt.s32.totalorder %s18_s17, %s18_s17 }
   0x3   :  { %p70_p0 = scmp.ne.s32.totalorder %s18_s17, %s69_s18  ;;  %p75_p2 = scmp.lt.s32.totalorder %s69_s18, %s69_s18 }
   0x5   :  { %p76_p3 = por %p75_p2, %p74_p1 }
   0x7   :  { %p77_p4 = pnand %p76_p3, %p70_p0 }
   0x9   :  { %80 = shalt.err (!%p77_p4)
}
   0xa   :  { %s83_s19 = smov [#allocation3]  }
   0xb   :  { %20 = dma.vmem_to_smem %s18_s17, 16, %s83_s19, [#allocation4]  }
   0xc   :  { %81 = dma.done.wait [#allocation4], 16  }
   0xd   :  { %82 = vsyncadd [#allocation4], 4294967280 }
   0xe   :  { %30 = sfence }
   0xf   :  { %v34_v0 = vld [vmem:[%s129_s3] sm:$0xff]  ;;  %v38_v1 = vlaneseq  ;;  %v84_v2 = vmov 127   ;;  %v41_v5 = vstv %s127_s1  ;;  %s85_s23 = smov 1   ;;  %s31_s24 = sld [smem:[#allocation3]] }
  0x10   :  { %68 = vset.pattern.permute.xlu0 %v84_v2  ;;  %v37_v3 = vrot.slane %v34_v0, 7  ;;  %s64_s25 = sld [smem:[#allocation3 + $0x1]]  ;;  %v52_v11 = vld [vmem:[%s128_s2] sm:$0xff] }
  0x11   :  { %v39_v4 = vshrl.u32 %v38_v1, 7  ;;  %v44_v7 = vand.u32 127, %v38_v1 }
  0x13   :  { %vm40_vm0 = vcmp.eq.s32.totalorder %v39_v4, 0  ;;  %vm45_vm1 = vcmp.eq.s32.totalorder %v44_v7, 0 }
  0x14   :  { %v42_v6 = vsel %vm40_vm0, %v41_v5, %v37_v3 }
  0x15   :  { %48 = vperm.xlu0 %68, %v42_v6   ;;  %v53_v9 = vstv %s31_s24 }
  0x16   :  { %v56_v14 = vstv %s64_s25 }
  0x19   :  { %35 = vrot.lane.b32.xlu0 %v34_v0, %s85_s23 }
  0x94   :  { %v49_v8 = vpop.permute.xlu0 %48 }
  0x98   :  { %v36_v10 = vpop.permute.xlu0 %35 }
  0x99   :  { %v51_v12 = vsel %vm45_vm1, %v49_v8, %v36_v10 }
  0x9a   :  { %v54_v13 = vmul.f32 %v53_v9, %v51_v12 }
  0x9c   :  { %v55_v15 = vadd.f32 %v54_v13, %v52_v11 }
  0x9e   :  { %v57_v16 = vsub.f32 %v55_v15, %v56_v14 }
  0xa0   :  { %58 = vst [vmem:[%s130_s4] sm:$0xff] %v57_v16 }
  0xa1   :  { %63 = vsyncpa [#allocation4], 1 }

</bundles_post_ra>
